<compile_context>
chip_gen: v6e
topology: v6e:2x2x1
jax: 0.10.0
libtpu: 0.0.40
codegen_flags: <defaults>
</compile_context>

<pallas_src>
import math
from functools import partial

import numpy as np
import jax
import jax.numpy as jnp
from jax.experimental import pallas as pl
from jax.experimental.pallas import tpu as pltpu


def _round_up(x, m):
    return (x + m - 1) // m * m


def _device_tuning():
    """Per-generation tile caps / working-set budgets / exp dtype."""
    kind = ""
    try:
        kind = jax.devices()[0].device_kind.lower()
    except Exception:
        pass
    if "v7" in kind:
        # 64 MiB VMEM per TC: conservative budget + row cap, 48 MiB scoped limit.
        return dict(budget=20 << 20, row_cap=512, vmem_limit=48 << 20, bf16_exp=True)
    if "v6" in kind:
        # 128 MiB VMEM: bigger row tiles amortize per-step overhead; bf16 EUP.
        return dict(budget=40 << 20, row_cap=1024, vmem_limit=64 << 20, bf16_exp=True)
    # v5e / unknown: big VMEM assumed conservatively, f32-only EUP.
    return dict(budget=40 << 20, row_cap=1024, vmem_limit=64 << 20, bf16_exp=False)


def gat_score_kernel(params_ref, hcol_ref, hrow_ref, rhs_ref, adj_ref, score_ref,
                     *, exp_dtype):
    # params (SMEM): [att_src, att_dst, bias]
    att_src = params_ref[0]
    att_dst = params_ref[1]
    bias = params_ref[2]

    hcol = hcol_ref[...]                               # (TM, 1)  f32 destination-row h
    hrow = hrow_ref[...]                               # (1, NC)  f32 source-column h (resident)
    adjf = adj_ref[...].astype(jnp.float32)            # (TM, NC) 1.0 = edge, 0.0 = non-edge

    # e[i, j] = leaky_relu(att_dst*h[i] + att_src*h[j], 0.2)  (unmasked)
    e = att_dst * hcol + att_src * hrow                # small-shape muls, one broadcast add
    e = jnp.maximum(e, 0.2 * e)

    # Softmax shift over the *unmasked* row max: identical softmax (shift cancels) and no
    # inf can appear since e <= e_max everywhere.
    # TODO(synk): if |att*h| could span > ~88 within a row, edge exps may underflow vs. a
    # non-edge max; not reachable at realistic feature scales (self-loops always present).
    e_max = jnp.max(e, axis=1, keepdims=True)          # (TM, 1)   XLU lane reduce
    p = jnp.exp((e - e_max).astype(exp_dtype))         # EUP (bf16 on v6e/v7x, f32 on v5e)

    # Post-exp multiplicative mask; pq is what feeds the MXU anyway.
    pq = p * adjf.astype(exp_dtype)                    # (TM, NC)

    # Row reductions on the MXU: rhs lane 0 = h, lane 1 = ones (rest zero, hoisted).
    red = jnp.dot(pq.astype(jnp.bfloat16), rhs_ref[...],
                  preferred_element_type=jnp.float32)  # (TM, 128) f32
    num = red[:, 0:1]                                  # sum_j p[i,j] * h[j]
    denom = red[:, 1:2] + jnp.float32(1e-30)           # padded rows: 0/eps -> 0 (no NaN)

    # score[i] = num/denom + bias ; reciprocal goes to the EUP slot.
    score_ref[...] = num * pl.reciprocal(denom, approx=True) + bias


def gat_score(h, adj_i8, att_src, att_dst, bias, tuning=None):
    """Masked single-head GAT attention score.

    h      : (N, 1) float32, precomputed W @ x per node (hoisted out of the kernel).
    adj_i8 : (N, N) int8, adj[dst, src] = 1, self-loops included.
    Returns: (N,) float32 scores.
    """
    if tuning is None:
        tuning = _device_tuning()
    exp_dtype = jnp.bfloat16 if tuning["bf16_exp"] else jnp.float32

    n = h.shape[0]
    n_cols = _round_up(n, 128)                         # lane-dense source axis

    # --- Row-tile selection -------------------------------------------------------
    # ~16 B of VMEM per adjacency element (2x int8 double buffer + adjf/e/p/pq
    # intermediates).  The resident rhs (bf16) and hrow (f32) slabs are subtracted from
    # the budget first.  Aim for >= 4 row tiles so the O(N^2) DMA pipelines and both
    # v7x TensorCores get work; keep tm a multiple of 32 for int8 (32,128) packing.
    resident_bytes = n_cols * 128 * 2 * 2 + n_cols * 4 * 2    # rhs + hrow, double-buffered
    adj_budget = max(32 * 16 * n_cols, tuning["budget"] - resident_bytes)
    tm_fit = max(32, (adj_budget // (16 * n_cols)) // 32 * 32)
    tm_split = _round_up(pl.cdiv(max(n, 1), 4), 32)
    tm = max(32, min(tuning["row_cap"], tm_fit, tm_split))

    num_tiles = pl.cdiv(n, tm)
    if num_tiles > 1 and num_tiles % 2 == 1:
        # Prefer an even tile count (v7x: 2 TensorCores) at a slightly smaller tile.
        tm_even = max(32, _round_up(pl.cdiv(n, num_tiles + 1), 32))
        if pl.cdiv(n, tm_even) % 2 == 0:
            tm = tm_even
            num_tiles = pl.cdiv(n, tm)
    n_rows = num_tiles * tm
    # --------------------------------------------------------------------------------

    hf = h.astype(jnp.float32).reshape(n, 1)
    hcol = jnp.pad(hf, ((0, n_rows - n), (0, 0)))                   # (n_rows, 1)
    hrow = jnp.pad(hf.reshape(1, n), ((0, 0), (0, n_cols - n)))     # (1, n_cols)
    adj_p = jnp.pad(adj_i8, ((0, n_rows - n), (0, n_cols - n)))     # (n_rows, n_cols)
    # MXU reduction RHS (hoisted out of the kernel): lane 0 = h, lane 1 = ones.
    rhs = jnp.zeros((n_cols, 128), jnp.bfloat16)
    rhs = rhs.at[:n, 0].set(hf[:, 0].astype(jnp.bfloat16))
    rhs = rhs.at[:, 1].set(jnp.bfloat16(1))
    params = jnp.array([att_src, att_dst, bias], dtype=jnp.float32)

    score = pl.pallas_call(
        partial(gat_score_kernel, exp_dtype=exp_dtype),
        out_shape=jax.ShapeDtypeStruct((n_rows, 1), jnp.float32),
        grid=(num_tiles,),
        in_specs=[
            pl.BlockSpec(memory_space=pltpu.MemorySpace.SMEM),      # params (scalars)
            pl.BlockSpec((tm, 1), lambda i: (i, 0)),                # h, destination rows
            pl.BlockSpec((1, n_cols), lambda i: (0, 0)),            # h, source row (resident)
            pl.BlockSpec((n_cols, 128), lambda i: (0, 0)),          # MXU rhs [h | 1] (resident)
            pl.BlockSpec((tm, n_cols), lambda i: (i, 0)),           # adj row slab (int8)
        ],
        # Padded tail rows produce score == bias and are sliced off below.
        out_specs=pl.BlockSpec((tm, 1), lambda i: (i, 0)),
        compiler_params=pltpu.CompilerParams(
            dimension_semantics=("parallel",),       # shard row tiles across TCs on v7x
            vmem_limit_bytes=tuning["vmem_limit"],
        ),
    )(params, hcol, hrow, rhs, adj_p)
    return score[:n, 0]


def attention_pooling(x, edge_index, edge_attr, w, att_src, att_dst, bias,
                      ratio=0.9, tuning=None):
    n = x.shape[0]

    # Dense adjacency (adj[dst, src] = 1) with self-loops, as GATConv does; int8 keeps
    # the only O(N^2) kernel input at 1 byte/element.
    # TODO(synk): multi-edges collapse in the dense mask (PyG softmax counts duplicates).
    adj = jnp.zeros((n, n), jnp.int8)
    adj = adj.at[edge_index[1], edge_index[0]].set(1)
    adj = adj.at[jnp.arange(n), jnp.arange(n)].set(1)

    # h = W x (heads=1, out_channels=1): hoisted out of the kernel (a 1-lane-wide MXU
    # matmul in-kernel wastes the MXU and doubles HBM traffic on x).
    h = jnp.dot(x.astype(jnp.float32), w.astype(jnp.float32))      # (N, 1)

    score = gat_score(h, adj, att_src, att_dst, bias, tuning=tuning)   # (N,)

    # topk: batch is None -> single graph, k = ceil(ratio * N), top scores first.
    k = int(math.ceil(ratio * n))
    perm = jnp.argsort(-score)[:k]

    filtered_x = x[perm]

    # filter_adj: keep edges whose both endpoints survive, relabel to position in perm.
    # TODO(synk): output size is data dependent -> compaction runs on host (forces a
    # device->host sync); a jit-able variant would return a padded/masked edge list.
    perm_np = np.asarray(perm)
    node_map = np.full(n, -1, dtype=np.int64)
    node_map[perm_np] = np.arange(k)
    ei = np.asarray(edge_index)
    new_row, new_col = node_map[ei[0]], node_map[ei[1]]
    keep = (new_row >= 0) & (new_col >= 0)
    filtered_edge_index = jnp.asarray(
        np.stack([new_row[keep], new_col[keep]]), dtype=edge_index.dtype)
    filtered_edge_attr = (edge_attr[jnp.asarray(np.nonzero(keep)[0])]
                          if edge_attr is not None else None)

    return filtered_x, filtered_edge_index, filtered_edge_attr, perm, score


if __name__ == "__main__":
    key = jax.random.PRNGKey(0)
    N, C, FE = 16, 32, 4
    k_x, k_e, k_w, k_as, k_ad = jax.random.split(key, 5)

    x = jax.random.normal(k_x, (N, C), dtype=jnp.float32)

    # bidirectional ring graph (E = 32 directed edges, no duplicates, no self-loops)
    src = np.concatenate([np.arange(N), (np.arange(N) + 1) % N])
    dst = np.concatenate([(np.arange(N) + 1) % N, np.arange(N)])
    edge_index = jnp.asarray(np.stack([src, dst]), dtype=jnp.int32)   # [2, E]
    edge_attr = jax.random.normal(k_e, (edge_index.shape[1], FE), dtype=jnp.float32)
    # TODO(synk): edge_attr does not enter the attention (GATConv edge_dim=None in the
    # reference module); it is only carried through / filtered.

    # GATConv(C, 1, heads=1, concat=False) parameters (deterministic synthetic init)
    w = jax.random.normal(k_w, (C, 1), dtype=jnp.float32) / np.sqrt(C)   # lin weight^T
    att_src = float(jax.random.normal(k_as, ()))                          # att_src (1,1,1)
    att_dst = float(jax.random.normal(k_ad, ()))                          # att_dst (1,1,1)
    bias = 0.1                                                            # bias (1,)

    tuning_auto = _device_tuning()
    tuning_f32 = dict(tuning_auto, bf16_exp=False)   # portable f32-exp config for the check

    # --- Run 1: f32-exp configuration, checked against a float64 numpy reference. ---
    fx, fei, fea, perm, score = attention_pooling(
        x, edge_index, edge_attr, w, att_src, att_dst, bias, ratio=0.9, tuning=tuning_f32)
    jax.block_until_ready((fx, fei, fea, perm, score))

    xn = np.asarray(x, dtype=np.float64)
    wn = np.asarray(w, dtype=np.float64)
    adj_ref = np.zeros((N, N), np.float64)
    adj_ref[np.asarray(edge_index[1]), np.asarray(edge_index[0])] = 1.0
    adj_ref[np.arange(N), np.arange(N)] = 1.0
    h_ref = xn @ wn
    e_ref = att_dst * h_ref + att_src * h_ref.T
    e_ref = np.where(e_ref > 0, e_ref, 0.2 * e_ref)
    e_ref = np.where(adj_ref > 0, e_ref, -np.inf)
    p_ref = np.exp(e_ref - e_ref.max(axis=1, keepdims=True))
    p_ref = np.where(adj_ref > 0, p_ref, 0.0)
    ref = (p_ref / p_ref.sum(axis=1, keepdims=True)) @ h_ref + bias

    # bf16 MXU reduction + approx EUP reciprocal -> relaxed tolerance vs exact f64 ref.
    assert np.allclose(np.asarray(score), ref[:, 0], rtol=4e-2, atol=4e-2), "score mismatch"
    assert fx.shape == (int(math.ceil(0.9 * N)), C)

    # --- Run 2: device-tuned configuration (bf16 exp on v6e/v7x): sanity check. ---
    _, _, _, _, score_fast = attention_pooling(
        x, edge_index, edge_attr, w, att_src, att_dst, bias, ratio=0.9, tuning=tuning_auto)
    jax.block_until_ready(score_fast)
    sf = np.asarray(score_fast)
    assert np.all(np.isfinite(sf)), "non-finite score in device-tuned path"
    # bf16 exp loses ~|arg|*2^-9 in the exponent -> loose tolerance (scores feed a top-k).
    assert np.allclose(sf, ref[:, 0], rtol=1e-1, atol=1e-1), "device-tuned score mismatch"

    print("KERNEL_OK")
</pallas_src>

<mosaic_0001>
module attributes {stable_mosaic.version = 11 : i64} {
  func.func @gat_score_kernel(%arg0: i32, %arg1: memref<3xf32, #tpu.memory_space<smem>>, %arg2: memref<32x1xf32, #tpu.memory_space<vmem>>, %arg3: memref<1x128xf32, #tpu.memory_space<vmem>>, %arg4: memref<128x128xbf16, #tpu.memory_space<vmem>>, %arg5: memref<32x128xi8, #tpu.memory_space<vmem>>, %arg6: memref<32x1xf32, #tpu.memory_space<vmem>>) attributes {dimension_semantics = [#tpu.dimension_semantics<parallel>], iteration_bounds = array<i64: 1>, scalar_prefetch = 0 : i64, scratch_operands = 0 : i64, tpu.core_type = #tpu.core_type<tc>, window_params = [{transform_indices = @transform_0, window_bounds = array<i64: 3>}, {transform_indices = @transform_1, window_bounds = array<i64: 32, 1>}, {pipeline_mode = #tpu.pipeline_mode<synchronous>, transform_indices = @transform_2, window_bounds = array<i64: 1, 128>}, {pipeline_mode = #tpu.pipeline_mode<synchronous>, transform_indices = @transform_3, window_bounds = array<i64: 128, 128>}, {transform_indices = @transform_4, window_bounds = array<i64: 32, 128>}, {transform_indices = @transform_5, window_bounds = array<i64: 32, 1>}]} {
    %c0 = arith.constant 0 : index
    %0 = memref.load %arg1[%c0] : memref<3xf32, #tpu.memory_space<smem>>
    %c1 = arith.constant 1 : index
    %1 = memref.load %arg1[%c1] : memref<3xf32, #tpu.memory_space<smem>>
    %c2 = arith.constant 2 : index
    %2 = memref.load %arg1[%c2] : memref<3xf32, #tpu.memory_space<smem>>
    %c0_0 = arith.constant 0 : index
    %c0_1 = arith.constant 0 : index
    %3 = vector.load %arg2[%c0_0, %c0_1] : memref<32x1xf32, #tpu.memory_space<vmem>>, vector<32x1xf32>
    %c0_2 = arith.constant 0 : index
    %c0_3 = arith.constant 0 : index
    %4 = vector.load %arg3[%c0_2, %c0_3] : memref<1x128xf32, #tpu.memory_space<vmem>>, vector<1x128xf32>
    %c0_4 = arith.constant 0 : index
    %c0_5 = arith.constant 0 : index
    %5 = vector.load %arg5[%c0_4, %c0_5] : memref<32x128xi8, #tpu.memory_space<vmem>>, vector<32x128xi8>
    %6 = arith.sitofp %5 : vector<32x128xi8> to vector<32x128xf32>
    %7 = vector.broadcast %1 : f32 to vector<32x1xf32>
    %8 = arith.mulf %7, %3 : vector<32x1xf32>
    %9 = vector.broadcast %0 : f32 to vector<1x128xf32>
    %10 = arith.mulf %9, %4 : vector<1x128xf32>
    %11 = vector.broadcast %8 : vector<32x1xf32> to vector<32x128xf32>
    %12 = vector.broadcast %10 : vector<1x128xf32> to vector<32x128xf32>
    %13 = arith.addf %11, %12 : vector<32x128xf32>
    %cst = arith.constant 2.000000e-01 : f32
    %14 = vector.broadcast %cst : f32 to vector<32x128xf32>
    %15 = arith.mulf %14, %13 : vector<32x128xf32>
    %16 = arith.maximumf %13, %15 : vector<32x128xf32>
    %cst_6 = arith.constant dense<0xFF800000> : vector<32xf32>
    %17 = vector.multi_reduction <maximumf>, %16, %cst_6 [1] : vector<32x128xf32> to vector<32xf32>
    %18 = vector.shape_cast %17 : vector<32xf32> to vector<32x1xf32>
    %19 = vector.broadcast %18 : vector<32x1xf32> to vector<32x128xf32>
    %20 = arith.subf %16, %19 : vector<32x128xf32>
    %21 = math.exp %20 : vector<32x128xf32>
    %22 = arith.mulf %21, %6 : vector<32x128xf32>
    %23 = arith.truncf %22 : vector<32x128xf32> to vector<32x128xbf16>
    %c0_7 = arith.constant 0 : index
    %c0_8 = arith.constant 0 : index
    %24 = vector.load %arg4[%c0_7, %c0_8] : memref<128x128xbf16, #tpu.memory_space<vmem>>, vector<128x128xbf16>
    %cst_9 = arith.constant dense<0.000000e+00> : vector<32x128xf32>
    %25 = tpu.matmul %23, %24, %cst_9 {dimension_numbers = #tpu.dot_dimension_numbers<[1], [0], [0], [1], [0, 0, 1, 1], [], []>} : vector<32x128xbf16>, vector<128x128xbf16>, vector<32x128xf32> -> vector<32x128xf32>
    %26 = vector.extract_strided_slice %25 {offsets = [0, 0], sizes = [32, 1], strides = [1, 1]} : vector<32x128xf32> to vector<32x1xf32>
    %27 = vector.extract_strided_slice %25 {offsets = [0, 1], sizes = [32, 1], strides = [1, 1]} : vector<32x128xf32> to vector<32x1xf32>
    %cst_10 = arith.constant 1.000000e-30 : f32
    %28 = vector.broadcast %cst_10 : f32 to vector<32x1xf32>
    %29 = arith.addf %27, %28 : vector<32x1xf32>
    %30 = tpu.reciprocal %29 {approx = true} : vector<32x1xf32> -> vector<32x1xf32>
    %31 = arith.mulf %26, %30 : vector<32x1xf32>
    %32 = vector.broadcast %2 : f32 to vector<32x1xf32>
    %33 = arith.addf %31, %32 : vector<32x1xf32>
    %c0_11 = arith.constant 0 : index
    %c0_12 = arith.constant 0 : index
    %34 = vector.load %arg6[%c0_11, %c0_12] : memref<32x1xf32, #tpu.memory_space<vmem>>, vector<32x1xf32>
    tpu.vector_store %arg6[%c0_11, %c0_12], %33 {strides = array<i32>} : memref<32x1xf32, #tpu.memory_space<vmem>>, vector<32x1xf32>,
    return
  }
  func.func @transform_0(%arg0: i32) -> i32 {
    %c0_i32 = arith.constant 0 : i32
    %c0_i32_0 = arith.constant 0 : i32
    return %c0_i32 : i32
  }
  func.func @transform_1(%arg0: i32) -> (i32, i32) {
    %c0_i32 = arith.constant 0 : i32
    %c0_i32_0 = arith.constant 0 : i32
    return %arg0, %c0_i32 : i32, i32
  }
  func.func @transform_2(%arg0: i32) -> (i32, i32) {
    %c0_i32 = arith.constant 0 : i32
    %c0_i32_0 = arith.constant 0 : i32
    %c0_i32_1 = arith.constant 0 : i32
    return %c0_i32, %c0_i32_0 : i32, i32
  }
  func.func @transform_3(%arg0: i32) -> (i32, i32) {
    %c0_i32 = arith.constant 0 : i32
    %c0_i32_0 = arith.constant 0 : i32
    %c0_i32_1 = arith.constant 0 : i32
    return %c0_i32, %c0_i32_0 : i32, i32
  }
  func.func @transform_4(%arg0: i32) -> (i32, i32) {
    %c0_i32 = arith.constant 0 : i32
    %c0_i32_0 = arith.constant 0 : i32
    return %arg0, %c0_i32 : i32, i32
  }
  func.func @transform_5(%arg0: i32) -> (i32, i32) {
    %c0_i32 = arith.constant 0 : i32
    %c0_i32_0 = arith.constant 0 : i32
    return %arg0, %c0_i32 : i32, i32
  }
}

</mosaic_0001>

<bundles_post_ra>
// kernel: tpu_custom_call.1
= control target key start
LH: loop header
LB: loop body
LE: loop exit
PB: predicated region body
PF: predicated region fallthrough
CT: control target
= control target key end

     0   :  { %10 = vsyncpa [#allocation4], 0  ;;  %s473_s0 = inlined_call_operand.vmem [shape: f32[3], index: 0, kind: input, shape index: {}]   ;;  %s474_s1 = inlined_call_operand.vmem [shape: f32[32,1], index: 1, kind: input, shape index: {}]   ;;  %s475_s2 = inlined_call_operand.vmem [shape: f32[1,128], index: 2, kind: input, shape index: {}]   ;;  %s476_s3 = inlined_call_operand.hbm [shape: bf16[128,128], index: 3, kind: input, shape index: {}]   ;;  %s477_s4 = inlined_call_operand.vmem [shape: s8[32,128], index: 4, kind: input, shape index: {}]   ;;  %s478_s5 = inlined_call_operand.vmem [shape: f32[32,1], index: 5, kind: output, shape index: {}]  }
   0x1   :  { %s18_s20 = sshll.u32 %s473_s0, 4  ;;  %s19_s20 = int_to_ptr.vmem [resolvable:$true] %s18_s20 }
   0x2   :  { %11 = vsyncpa [#allocation3], 0  ;;  %s365_s21 = scalar_lea.vmem %s19_s20, 16  ;;  %p370_p1 = scmp.lt.s32.totalorder %s19_s20, %s19_s20 }
   0x3   :  { %p366_p0 = scmp.ne.s32.totalorder %s19_s20, %s365_s21  ;;  %p371_p2 = scmp.lt.s32.totalorder %s365_s21, %s365_s21 }
   0x5   :  { %p372_p3 = por %p371_p2, %p370_p1 }
   0x7   :  { %p373_p4 = pnand %p372_p3, %p366_p0 }
   0x9   :  { %376 = shalt.err (!%p373_p4)
}
   0xa   :  { %s401_s22 = smov [#allocation2]   ;;  %s402_s23 = smov [#allocation5]  }
   0xb   :  { %21 = dma.vmem_to_smem %s19_s20, 16, %s401_s22, [#allocation4]  }
   0xc   :  { %s31_s24 = sshll.u32 %s402_s23, 4  ;;  %s32_s24 = int_to_ptr.vmem [resolvable:$true] %s31_s24 }
   0xd   :  { %s385_s25 = scalar_lea.vmem %s32_s24, 1024  ;;  %p390_p6 = scmp.lt.s32.totalorder %s32_s24, %s32_s24 }
   0xe   :  { %p386_p5 = scmp.ne.s32.totalorder %s32_s24, %s385_s25  ;;  %p391_p7 = scmp.lt.s32.totalorder %s385_s25, %s385_s25 }
  0x10   :  { %p392_p8 = por %p391_p7, %p390_p6 }
  0x12   :  { %p393_p9 = pnand %p392_p8, %p386_p5 }
  0x14   :  { %396 = shalt.err (!%p393_p9)
}
  0x15   :  { %s403_s0 = smov 64   ;;  %s404_s26 = smov 4  }
  0x16   :  { %37 = dma.hbm_to_vmem [thread:$0]  %s476_s3, 1024, %s32_s24, [#allocation3], %s403_s0, %s403_s0, %s404_s26  }
  0x17   :  { %397 = dma.done.wait [#allocation4], 16  }
  0x18   :  { %398 = vsyncadd [#allocation4], 4294967280 }
  0x19   :  { %399 = dma.done.wait [#allocation3], 1024  }
  0x1a   :  { %400 = vsyncadd [#allocation3], 4294966272 }
  0x1b   :  { %46 = sfence }
  0x1c   :  { %s293_s29 = sld [smem:[#allocation2 + $0x1]]  ;;  %v405_v0 = vmov 0   ;;  %v53_v1 = vld [vmem:[%s474_s1 + $0x10] sm:$0xff]  ;;  %v51_v2 = vld [vmem:[%s474_s1] sm:$0xff]  ;;  %v54_v3 = vld [vmem:[%s474_s1 + $0x18] sm:$0xff]  ;;  %v93_v11 = vlaneseq  ;;  %vm282_vm0 = vcmask 7168  }
  0x1d   :  { %340 = vset.pattern.permute.xlu1 %v405_v0  ;;  %339 = vset.pattern.permute.xlu0 %v405_v0  ;;  %v52_v4 = vld [vmem:[%s474_s1 + $0x8] sm:$0xff]  ;;  %v341_v10 = vld [vmem:[#allocation5 + $0x38] sm:$0xff]   ;;  %s48_s12 = sld [smem:[#allocation2]]  ;;  %v55_v13 = vld [vmem:[%s475_s2] sm:$0x1] }
  0x1e   :  { %313 = vmatprep.subr.bf16.mxu0 %v341_v10  ;;  %v94_v12 = vshrl.u32 %v93_v11, 7  ;;  %v342_v34 = vld [vmem:[#allocation5 + $0x30] sm:$0xff]   ;;  %v343_v35 = vld [vmem:[#allocation5 + $0x28] sm:$0xff]   ;;  %v344_v36 = vld [vmem:[#allocation5 + $0x20] sm:$0xff]   ;;  %s294_s15 = sld [smem:[#allocation2 + $0x2]] }
  0x1f   :  { %314 = vmatpush3.bf16.msra.mxu0 %v341_v10  ;;  %v345_v37 = vld [vmem:[#allocation5 + $0x18] sm:$0xff]   ;;  %v346_v38 = vld [vmem:[#allocation5 + $0x10] sm:$0xff]   ;;  %v347_v39 = vld [vmem:[#allocation5 + $0x8] sm:$0xff]  }
  0x20   :  { %v95_v15 = vsub.s32 0, %v94_v12  ;;  %315 = vmatprep.subr.bf16.mxu0 %v342_v34  ;;  %v348_v40 = vld [vmem:[#allocation5] sm:$0xff]  }
  0x21   :  { %v56_v53 = vld [vmem:[%s477_s4] sm:$0xff]  ;;  %s406_s4 = smov 127  }
  0x22   :  { %v65_v5 = vstv %s293_s29  ;;  %v57_v54 = vunpack.c.0.s8 %v56_v53  ;;  %v58_v55 = vunpack.c.1.s8 %v56_v53  ;;  %v59_v58 = vunpack.c.2.s8 %v56_v53 }
  0x23   :  { %v68_v6 = vmul.f32 %v65_v5, %v53_v1  ;;  %v66_v7 = vmul.f32 %v65_v5, %v51_v2  ;;  %v69_v8 = vmul.f32 %v65_v5, %v54_v3  ;;  %v67_v9 = vmul.f32 %v65_v5, %v52_v4  ;;  %316 = vmatpush3.bf16.msra.mxu0 %v342_v34 }
  0x24   :  { %v70_v14 = vstv %s48_s12  ;;  %317 = vmatprep.subr.bf16.mxu0 %v343_v35  ;;  %v61_v56 = vcvt.s32.f32 %v57_v54  ;;  %v62_v57 = vcvt.s32.f32 %v58_v55  ;;  %v60_v59 = vunpack.c.3.s8 %v56_v53 }
  0x25   :  { %84 = vperm.xlu1 %340, %v68_v6   ;;  %74 = vperm.xlu0 %339, %v66_v7   ;;  %v71_v16 = vmul.f32 %v70_v14, %v55_v13  ;;  %v63_v0 = vcvt.s32.f32 %v59_v58 }
  0x26   :  { %v64_v1 = vcvt.s32.f32 %v60_v59 }
  0x27   :  { %v96_v17 = vrot.slane %v71_v16, %v95_v15  ;;  %318 = vmatpush3.bf16.msra.mxu0 %v343_v35 }
  0x28   :  { %319 = vmatprep.subr.bf16.mxu0 %v344_v36 }
  0x29   :  { %89 = vperm.xlu1 %340, %v69_v8   ;;  %79 = vperm.xlu0 %339, %v67_v9  }
  0x2b   :  { %320 = vmatpush3.bf16.msra.mxu0 %v344_v36 }
  0x2c   :  { %321 = vmatprep.subr.bf16.mxu0 %v345_v37 }
  0x2f   :  { %322 = vmatpush3.bf16.msra.mxu0 %v345_v37 }
  0x30   :  { %323 = vmatprep.subr.bf16.mxu0 %v346_v38 }
  0x33   :  { %324 = vmatpush3.bf16.msra.mxu0 %v346_v38 }
  0x34   :  { %325 = vmatprep.subr.bf16.mxu0 %v347_v39 }
  0x37   :  { %326 = vmatpush3.bf16.msra.mxu0 %v347_v39 }
  0x38   :  { %327 = vmatprep.subr.bf16.mxu0 %v348_v40 }
  0x3b   :  { %328 = vmatpush3.bf16.msra.mxu0 %v348_v40 }
  0xa0   :  { %v85_v18 = vpop.permute.xlu1 %84  ;;  %v75_v19 = vpop.permute.xlu0 %74 }
  0xa1   :  { %v100_v20 = vadd.f32 %v96_v17, %v85_v18  ;;  %v98_v21 = vadd.f32 %v96_v17, %v75_v19 }
  0xa3   :  { %v102_v22 = vmul.f32 0.2, %v98_v21  ;;  %v104_v25 = vmul.f32 0.2, %v100_v20 }
  0xa4   :  { %v90_v23 = vpop.permute.xlu1 %89  ;;  %v80_v24 = vpop.permute.xlu0 %79 }
  0xa5   :  { %v101_v26 = vadd.f32 %v96_v17, %v90_v23  ;;  %v99_v27 = vadd.f32 %v96_v17, %v80_v24  ;;  %v106_v28 = vmax.f32 %v98_v21, %v102_v22  ;;  %v108_v32 = vmax.f32 %v100_v20, %v104_v25 }
  0xa6   :  { %v277_v20 = vstv %s294_s15 }
  0xa7   :  { %v103_v29 = vmul.f32 0.2, %v99_v27  ;;  %110 = vmax.xlane.f32.xlu0 %v106_v28  ;;  %v105_v30 = vmul.f32 0.2, %v101_v26 }
  0xa9   :  { %v107_v31 = vmax.f32 %v99_v27, %v103_v29  ;;  %v109_v33 = vmax.f32 %v101_v26, %v105_v30 }
  0xab   :  { %112 = vmax.xlane.f32.xlu1 %v107_v31  ;;  %114 = vmax.xlane.f32.xlu0 %v108_v32 }
  0xaf   :  { %116 = vmax.xlane.f32.xlu0 %v109_v33 }
 0x130   :  { %v111_v41 = vpop.xlane.xlu0 %110 }
 0x131   :  { %v118_v42 = vsub.f32 %v106_v28, %v111_v41 }
 0x133   :  { %v122_v43 = vmul.f32 1.442695, %v118_v42 }
 0x134   :  { %v113_v44 = vpop.xlane.xlu1 %112  ;;  %v115_v45 = vpop.xlane.xlu0 %114 }
 0x135   :  { %v119_v46 = vsub.f32 %v107_v31, %v113_v44  ;;  %v120_v47 = vsub.f32 %v108_v32, %v115_v45  ;;  %349 = vpow2.f32 %v122_v43 }
 0x137   :  { %v124_v48 = vmul.f32 1.442695, %v119_v46  ;;  %v126_v49 = vmul.f32 1.442695, %v120_v47 }
 0x138   :  { %v117_v50 = vpop.xlane.xlu0 %116 }
 0x139   :  { %351 = vpow2.f32 %v124_v48  ;;  %v121_v51 = vsub.f32 %v109_v33, %v117_v50 }
 0x13a   :  { %353 = vpow2.f32 %v126_v49 }
 0x13b   :  { %v128_v52 = vmul.f32 1.442695, %v121_v51 }
 0x13d   :  { %355 = vpow2.f32 %v128_v52 }
 0x142   :  { %v350_v60 = vpop.eup %349 }
 0x143   :  { %v130_v62 = vmul.f32 %v350_v60, %v61_v56 }
 0x146   :  { %v352_v61 = vpop.eup %351 }
 0x147   :  { %v131_v63 = vmul.f32 %v352_v61, %v62_v57  ;;  %v354_v2 = vpop.eup %353 }
 0x148   :  { %v132_v5 = vmul.f32 %v354_v2, %v63_v0 }
 0x149   :  { %v134_v3 = vpack.c.bf16 %v131_v63, %v130_v62 }
 0x14a   :  { %v356_v4 = vpop.eup %355 }
 0x14b   :  { %329 = vmatprep.mubr.bf16.mxu0 %v134_v3  ;;  %v133_v6 = vmul.f32 %v356_v4, %v64_v1 }
 0x14d   :  { %v135_v7 = vpack.c.bf16 %v133_v6, %v132_v5 }
 0x14f   :  { %330 = vmatmul.mubr.bf16.vlgmr.msra.gmra.mxu0 %v135_v7 }
 0x20f   :  { %v331_v8 = vpop.f32.mrf.mxu0 }
 0x210   :  { %v251_v11 = vadd.f32 1e-30, %v331_v8 }
 0x211   :  { %v234_v9 = vpop.f32.mrf.mxu0 }
 0x212   :  { %v249_v10 = vadd.f32 1e-30, %v234_v9 }
 0x213   :  { %v332_v12 = vpop.f32.mrf.mxu0 }
 0x214   :  { %357 = vrcp.f32 %v249_v10  ;;  %v252_v15 = vadd.f32 1e-30, %v332_v12 }
 0x215   :  { %v237_v13 = vpop.f32.mrf.mxu0  ;;  %359 = vrcp.f32 %v251_v11 }
 0x216   :  { %v250_v14 = vadd.f32 1e-30, %v237_v13 }
 0x218   :  { %361 = vrcp.f32 %v250_v14 }
 0x219   :  { %363 = vrcp.f32 %v252_v15 }
 0x221   :  { %v358_v16 = vpop.eup %357 }
 0x222   :  { %261 = vrot.lane.b32.xlu1 %v358_v16, %s406_s4  ;;  %v360_v17 = vpop.eup %359 }
 0x225   :  { %v362_v18 = vpop.eup %361 }
 0x226   :  { %265 = vrot.lane.b32.xlu1 %v360_v17, %s406_s4  ;;  %263 = vrot.lane.b32.xlu0 %v362_v18, %s406_s4  ;;  %v364_v19 = vpop.eup %363 }
 0x22a   :  { %267 = vrot.lane.b32.xlu1 %v364_v19, %s406_s4 }
 0x294   :  { %v262_v21 = vpop.permute.xlu1 %261 }
 0x295   :  { %v273_v22 = vmul.f32 %v262_v21, %v234_v9 }
 0x297   :  { %v278_v23 = vadd.f32 %v277_v20, %v273_v22 }
 0x298   :  { %v266_v24 = vpop.permute.xlu1 %265  ;;  %v264_v25 = vpop.permute.xlu0 %263 }
 0x299   :  { %283 = vst.msk [vmem:[%s478_s5] sm:$0xff] %vm282_vm0, %v278_v23  ;;  %v275_v26 = vmul.f32 %v331_v8, %v266_v24  ;;  %v274_v27 = vmul.f32 %v264_v25, %v237_v13 }
 0x29b   :  { %v280_v28 = vadd.f32 %v277_v20, %v275_v26  ;;  %v279_v29 = vadd.f32 %v277_v20, %v274_v27 }
 0x29c   :  { %v268_v30 = vpop.permute.xlu1 %267 }
 0x29d   :  { %285 = vst.msk [vmem:[%s478_s5 + $0x10] sm:$0xff] %vm282_vm0, %v280_v28  ;;  %284 = vst.msk [vmem:[%s478_s5 + $0x8] sm:$0xff] %vm282_vm0, %v279_v29  ;;  %v276_v31 = vmul.f32 %v332_v12, %v268_v30 }
 0x29f   :  { %v281_v32 = vadd.f32 %v277_v20, %v276_v31 }
 0x2a1   :  { %286 = vst.msk [vmem:[%s478_s5 + $0x18] sm:$0xff] %vm282_vm0, %v281_v32 }
 0x2a2   :  { %291 = vsyncpa [#allocation3], 1 }
 0x2a3   :  { %292 = vsyncpa [#allocation4], 1 }

</bundles_post_ra>
